<compile_context>
chip_gen: v7x
topology: tpu7x:2x2x1
jax: 0.10.0
libtpu: 0.0.40
codegen_flags: <defaults>
</compile_context>

<pallas_src>
import functools

import jax
import jax.numpy as jnp
from jax import lax
from jax.experimental import pallas as pl
from jax.experimental.pallas import tpu as pltpu


def _cnn_model_kernel(x_ref, wc_ref, bc_ref, w1_ref, b1_ref, w2_ref, b2_ref, o_ref):
    """One batch tile: conv1d(k=1) + ReLU + fc1 + ReLU + fc2, batch on lanes, f32 acc."""
    cdt = wc_ref.dtype                      # compute dtype (bf16 default, f32 for exact path)
    x = x_ref[...].astype(cdt)              # (tb, Cin); cast in-kernel (free VPU op)

    # conv1d(kernel_size=1): (64, Cin) . (tb, Cin)^T -> (64, tb)   (batch on lanes)
    h = lax.dot_general(wc_ref[...], x, (((1,), (1,)), ((), ())),
                        preferred_element_type=jnp.float32)
    h = jnp.maximum(h + bc_ref[...], 0.0).astype(cdt)               # (64, tb)

    # fc1: (H, 64) . (64, tb) -> (H, tb)
    h = jnp.dot(w1_ref[...], h, preferred_element_type=jnp.float32)
    h = jnp.maximum(h + b1_ref[...], 0.0)                           # (H, tb), f32

    if o_ref.shape[0] == 1:
        # fc2 with out_size == 1: broadcast-multiply + sublane reduce (VPU/XLU);
        # keeps the degenerate M=1 matmul off the MXU result FIFO.  w2_ref: (H, 1) f32.
        y = jnp.sum(h * w2_ref[...], axis=0, keepdims=True)         # (1, tb)
    else:
        # General fc2 on the MXU: (O, H) . (H, tb) -> (O, tb)
        y = jnp.dot(w2_ref[...], h.astype(cdt), preferred_element_type=jnp.float32)

    o_ref[...] = y + b2_ref[...]                                    # (O, tb) + (O, 1)


def cnn_model_forward(x, params, *, block_b=2048, compute_dtype=jnp.bfloat16):
    """x: (B, 1, input_size) float32. Returns (B, output_size) float32."""
    # Params in PyTorch layouts: wc (64,Cin), bc (64,), w1 (H,64), b1 (H,), w2 (O,H), b2 (O,)
    wc, bc, w1, b1, w2, b2 = params
    x2d = jnp.squeeze(x, axis=1)            # (B, Cin), stays f32 (cast happens in-kernel)
    B, cin = x2d.shape
    out_size = w2.shape[0]

    # Batch tile: single block for small B, else a multiple-of-128 tile (multiples of 256
    # recommended for full-width v6e/v7x MXU passes).  Ragged last tile handled by Pallas.
    if B <= block_b:
        tb, nb = B, 1
    else:
        assert block_b % 128 == 0, "block_b must be a multiple of 128"
        tb, nb = block_b, pl.cdiv(B, block_b)

    # PyTorch layouts are already the transposed layouts the lane-dense dataflow wants.
    wc_k = wc.astype(compute_dtype)                    # (64, Cin)
    w1_k = w1.astype(compute_dtype)                    # (H, 64)
    bc_k = bc.reshape(-1, 1).astype(jnp.float32)       # (64, 1)
    b1_k = b1.reshape(-1, 1).astype(jnp.float32)       # (H, 1)
    b2_k = b2.reshape(-1, 1).astype(jnp.float32)       # (O, 1)
    if out_size == 1:
        w2_k = w2.reshape(-1, 1).astype(jnp.float32)   # (H, 1) for the VPU/XLU fc2 path
    else:
        w2_k = w2.astype(compute_dtype)                # (O, H) for the MXU fc2 path

    def const_spec(arr):
        # Whole array, same block every grid step -> stays resident in VMEM.
        return pl.BlockSpec(arr.shape, lambda i: (0, 0))

    out_t = pl.pallas_call(
        _cnn_model_kernel,
        out_shape=jax.ShapeDtypeStruct((out_size, B), jnp.float32),
        grid=(nb,),
        in_specs=[
            pl.BlockSpec((tb, cin), lambda i: (i, 0)),   # x tiled over batch (no pad / no cast)
            const_spec(wc_k), const_spec(bc_k),
            const_spec(w1_k), const_spec(b1_k),
            const_spec(w2_k), const_spec(b2_k),
        ],
        out_specs=pl.BlockSpec((out_size, tb), lambda i: (0, i)),   # lane-dense over batch
        compiler_params=pltpu.CompilerParams(
            # TODO(synk): on v7x, confirm in a trace that this axis shards across both
            # TensorCores; if it does not, switch to pltpu.CORE_PARALLEL on this axis.
            dimension_semantics=("parallel",),
        ),
    )(x2d, wc_k, bc_k, w1_k, b1_k, w2_k, b2_k)

    return out_t.T                                      # (B, out_size), f32


def init_params(key, input_size, hidden_size, output_size=1, out_channels=64):
    """Deterministic synthetic parameters in PyTorch layouts."""
    ks = jax.random.split(key, 6)
    wc = jax.random.normal(ks[0], (out_channels, input_size), jnp.float32) * 0.1
    bc = jax.random.normal(ks[1], (out_channels,), jnp.float32) * 0.1
    w1 = jax.random.normal(ks[2], (hidden_size, out_channels), jnp.float32) * 0.1
    b1 = jax.random.normal(ks[3], (hidden_size,), jnp.float32) * 0.1
    w2 = jax.random.normal(ks[4], (output_size, hidden_size), jnp.float32) * 0.1
    b2 = jax.random.normal(ks[5], (output_size,), jnp.float32) * 0.1
    return (wc, bc, w1, b1, w2, b2)


def reference_forward(x, params):
    """Pure-JAX reference mirroring the PyTorch forward (f32 everywhere)."""
    wc, bc, w1, b1, w2, b2 = params
    x2d = jnp.squeeze(x, axis=1)
    h = jnp.maximum(x2d @ wc.T + bc, 0.0)
    h = jnp.maximum(h @ w1.T + b1, 0.0)
    return h @ w2.T + b2


if __name__ == "__main__":
    input_size, hidden_size, output_size = 16, 32, 1

    key = jax.random.PRNGKey(0)
    kx, kp, kp2 = jax.random.split(key, 3)
    params = init_params(kp, input_size, hidden_size, output_size)

    # --- main case: B=512, two 256-wide batch tiles (multiple of 256 -> full MXU N) ---
    B = 512
    x = jax.random.normal(kx, (B, 1, input_size), jnp.float32)
    ref = reference_forward(x, params)

    fwd_f32 = functools.partial(cnn_model_forward, block_b=256, compute_dtype=jnp.float32)
    out_f32 = jax.block_until_ready(fwd_f32(x, params))
    assert out_f32.shape == (B, output_size)
    assert jnp.allclose(out_f32, ref, atol=1e-4, rtol=1e-4)

    # default bf16 compute path (f32 accumulation / biases / output): looser tolerance
    out_bf16 = jax.block_until_ready(cnn_model_forward(x, params, block_b=256))
    assert out_bf16.shape == (B, output_size)
    assert jnp.allclose(out_bf16, ref, atol=2e-2, rtol=2e-2)

    # --- tiny batch: single tile, tb == B == 8 ---
    x_small = jax.random.normal(kx, (8, 1, input_size), jnp.float32)
    out_small = jax.block_until_ready(
        cnn_model_forward(x_small, params, compute_dtype=jnp.float32))
    assert jnp.allclose(out_small, reference_forward(x_small, params), atol=1e-4, rtol=1e-4)

    # --- ragged batch: B=300 with 256-wide tiles (no jnp.pad; Pallas masks the tail) ---
    x_rag = jax.random.normal(kx, (300, 1, input_size), jnp.float32)
    out_rag = jax.block_until_ready(
        cnn_model_forward(x_rag, params, block_b=256, compute_dtype=jnp.float32))
    assert out_rag.shape == (300, output_size)
    assert jnp.allclose(out_rag, reference_forward(x_rag, params), atol=1e-4, rtol=1e-4)

    # --- output_size > 1 exercises the MXU fc2 path ---
    params4 = init_params(kp2, input_size, hidden_size, output_size=4)
    out4 = jax.block_until_ready(
        cnn_model_forward(x, params4, block_b=256, compute_dtype=jnp.float32))
    assert out4.shape == (B, 4)
    assert jnp.allclose(out4, reference_forward(x, params4), atol=1e-4, rtol=1e-4)

    print("KERNEL_OK")
</pallas_src>

<mosaic_0001>
module attributes {stable_mosaic.version = 11 : i64} {
  func.func @_cnn_model_kernel(%arg0: i32, %arg1: memref<256x16xf32, #tpu.memory_space<vmem>>, %arg2: memref<64x16xf32, #tpu.memory_space<vmem>>, %arg3: memref<64x1xf32, #tpu.memory_space<vmem>>, %arg4: memref<32x64xf32, #tpu.memory_space<vmem>>, %arg5: memref<32x1xf32, #tpu.memory_space<vmem>>, %arg6: memref<32x1xf32, #tpu.memory_space<vmem>>, %arg7: memref<1x1xf32, #tpu.memory_space<vmem>>, %arg8: memref<1x256xf32, #tpu.memory_space<vmem>>) attributes {dimension_semantics = [#tpu.dimension_semantics<parallel>], iteration_bounds = array<i64: 2>, scalar_prefetch = 0 : i64, scratch_operands = 0 : i64, tpu.core_type = #tpu.core_type<tc>, window_params = [{transform_indices = @transform_0, window_bounds = array<i64: 256, 16>}, {pipeline_mode = #tpu.pipeline_mode<synchronous>, transform_indices = @transform_1, window_bounds = array<i64: 64, 16>}, {pipeline_mode = #tpu.pipeline_mode<synchronous>, transform_indices = @transform_2, window_bounds = array<i64: 64, 1>}, {pipeline_mode = #tpu.pipeline_mode<synchronous>, transform_indices = @transform_3, window_bounds = array<i64: 32, 64>}, {pipeline_mode = #tpu.pipeline_mode<synchronous>, transform_indices = @transform_4, window_bounds = array<i64: 32, 1>}, {pipeline_mode = #tpu.pipeline_mode<synchronous>, transform_indices = @transform_5, window_bounds = array<i64: 32, 1>}, {pipeline_mode = #tpu.pipeline_mode<synchronous>, transform_indices = @transform_6, window_bounds = array<i64: 1, 1>}, {transform_indices = @transform_7, window_bounds = array<i64: 1, 256>}]} {
    %c0 = arith.constant 0 : index
    %c0_0 = arith.constant 0 : index
    %0 = vector.load %arg1[%c0, %c0_0] : memref<256x16xf32, #tpu.memory_space<vmem>>, vector<256x16xf32>
    %c0_1 = arith.constant 0 : index
    %c0_2 = arith.constant 0 : index
    %1 = vector.load %arg2[%c0_1, %c0_2] : memref<64x16xf32, #tpu.memory_space<vmem>>, vector<64x16xf32>
    %cst = arith.constant dense<0.000000e+00> : vector<64x256xf32>
    %2 = tpu.matmul %1, %0, %cst {dimension_numbers = #tpu.dot_dimension_numbers<[1], [1], [0], [0], [0, 0, 1, 0], [], []>} : vector<64x16xf32>, vector<256x16xf32>, vector<64x256xf32> -> vector<64x256xf32>
    %c0_3 = arith.constant 0 : index
    %c0_4 = arith.constant 0 : index
    %3 = vector.load %arg3[%c0_3, %c0_4] : memref<64x1xf32, #tpu.memory_space<vmem>>, vector<64x1xf32>
    %4 = vector.broadcast %3 : vector<64x1xf32> to vector<64x256xf32>
    %5 = arith.addf %2, %4 : vector<64x256xf32>
    %cst_5 = arith.constant 0.000000e+00 : f32
    %6 = vector.broadcast %cst_5 : f32 to vector<64x256xf32>
    %7 = arith.maximumf %5, %6 : vector<64x256xf32>
    %c0_6 = arith.constant 0 : index
    %c0_7 = arith.constant 0 : index
    %8 = vector.load %arg4[%c0_6, %c0_7] : memref<32x64xf32, #tpu.memory_space<vmem>>, vector<32x64xf32>
    %cst_8 = arith.constant dense<0.000000e+00> : vector<32x256xf32>
    %9 = tpu.matmul %8, %7, %cst_8 {dimension_numbers = #tpu.dot_dimension_numbers<[1], [0], [0], [1], [0, 0, 1, 1], [], []>} : vector<32x64xf32>, vector<64x256xf32>, vector<32x256xf32> -> vector<32x256xf32>
    %c0_9 = arith.constant 0 : index
    %c0_10 = arith.constant 0 : index
    %10 = vector.load %arg5[%c0_9, %c0_10] : memref<32x1xf32, #tpu.memory_space<vmem>>, vector<32x1xf32>
    %11 = vector.broadcast %10 : vector<32x1xf32> to vector<32x256xf32>
    %12 = arith.addf %9, %11 : vector<32x256xf32>
    %cst_11 = arith.constant 0.000000e+00 : f32
    %13 = vector.broadcast %cst_11 : f32 to vector<32x256xf32>
    %14 = arith.maximumf %12, %13 : vector<32x256xf32>
    %c0_12 = arith.constant 0 : index
    %c0_13 = arith.constant 0 : index
    %15 = vector.load %arg6[%c0_12, %c0_13] : memref<32x1xf32, #tpu.memory_space<vmem>>, vector<32x1xf32>
    %16 = vector.broadcast %15 : vector<32x1xf32> to vector<32x256xf32>
    %17 = arith.mulf %14, %16 : vector<32x256xf32>
    %cst_14 = arith.constant dense<0.000000e+00> : vector<256xf32>
    %18 = vector.multi_reduction <add>, %17, %cst_14 [0] : vector<32x256xf32> to vector<256xf32>
    %19 = vector.shape_cast %18 : vector<256xf32> to vector<1x256xf32>
    %c0_15 = arith.constant 0 : index
    %c0_16 = arith.constant 0 : index
    %20 = vector.load %arg7[%c0_15, %c0_16] : memref<1x1xf32, #tpu.memory_space<vmem>>, vector<1x1xf32>
    %21 = vector.broadcast %20 : vector<1x1xf32> to vector<1x256xf32>
    %22 = arith.addf %19, %21 : vector<1x256xf32>
    %c0_17 = arith.constant 0 : index
    %c0_18 = arith.constant 0 : index
    %23 = vector.load %arg8[%c0_17, %c0_18] : memref<1x256xf32, #tpu.memory_space<vmem>>, vector<1x256xf32>
    tpu.vector_store %arg8[%c0_17, %c0_18], %22 {strides = array<i32>} : memref<1x256xf32, #tpu.memory_space<vmem>>, vector<1x256xf32>,
    return
  }
  func.func @transform_0(%arg0: i32) -> (i32, i32) {
    %c0_i32 = arith.constant 0 : i32
    %c0_i32_0 = arith.constant 0 : i32
    return %arg0, %c0_i32 : i32, i32
  }
  func.func @transform_1(%arg0: i32) -> (i32, i32) {
    %c0_i32 = arith.constant 0 : i32
    %c0_i32_0 = arith.constant 0 : i32
    %c0_i32_1 = arith.constant 0 : i32
    return %c0_i32, %c0_i32_0 : i32, i32
  }
  func.func @transform_2(%arg0: i32) -> (i32, i32) {
    %c0_i32 = arith.constant 0 : i32
    %c0_i32_0 = arith.constant 0 : i32
    %c0_i32_1 = arith.constant 0 : i32
    return %c0_i32, %c0_i32_0 : i32, i32
  }
  func.func @transform_3(%arg0: i32) -> (i32, i32) {
    %c0_i32 = arith.constant 0 : i32
    %c0_i32_0 = arith.constant 0 : i32
    %c0_i32_1 = arith.constant 0 : i32
    return %c0_i32, %c0_i32_0 : i32, i32
  }
  func.func @transform_4(%arg0: i32) -> (i32, i32) {
    %c0_i32 = arith.constant 0 : i32
    %c0_i32_0 = arith.constant 0 : i32
    %c0_i32_1 = arith.constant 0 : i32
    return %c0_i32, %c0_i32_0 : i32, i32
  }
  func.func @transform_5(%arg0: i32) -> (i32, i32) {
    %c0_i32 = arith.constant 0 : i32
    %c0_i32_0 = arith.constant 0 : i32
    %c0_i32_1 = arith.constant 0 : i32
    return %c0_i32, %c0_i32_0 : i32, i32
  }
  func.func @transform_6(%arg0: i32) -> (i32, i32) {
    %c0_i32 = arith.constant 0 : i32
    %c0_i32_0 = arith.constant 0 : i32
    %c0_i32_1 = arith.constant 0 : i32
    return %c0_i32, %c0_i32_0 : i32, i32
  }
  func.func @transform_7(%arg0: i32) -> (i32, i32) {
    %c0_i32 = arith.constant 0 : i32
    %c0_i32_0 = arith.constant 0 : i32
    return %c0_i32, %arg0 : i32, i32
  }
}

</mosaic_0001>

<bundles_post_ra>
// kernel: tpu_custom_call.1
= control target key start
LH: loop header
LB: loop body
LE: loop exit
PB: predicated region body
PF: predicated region fallthrough
CT: control target
= control target key end

     0   :  { %s1520_s0 = inlined_call_operand.vmem [shape: f32[512,16], index: 0, kind: input, shape index: {}]   ;;  %s1521_s1 = inlined_call_operand.vmem [shape: f32[64,16], index: 1, kind: input, shape index: {}]   ;;  %s1522_s2 = inlined_call_operand.vmem [shape: f32[64,1], index: 2, kind: input, shape index: {}]   ;;  %s1523_s3 = inlined_call_operand.vmem [shape: f32[32,64], index: 3, kind: input, shape index: {}]   ;;  %s1524_s4 = inlined_call_operand.vmem [shape: f32[32,1], index: 4, kind: input, shape index: {}]   ;;  %s1525_s5 = inlined_call_operand.vmem [shape: f32[32,1], index: 5, kind: input, shape index: {}]   ;;  %s1526_s6 = inlined_call_operand.<no memory space> [shape: f32[1,1], index: 6, kind: input, shape index: {}]   ;;  %s1527_s7 = inlined_call_operand.hbm [shape: f32[1,512], index: 7, kind: output, shape index: {}]  }
   0x1   :  { %v12_v0 = vstv %s1526_s6 }
   0x2   :  { %13 = vst [vmem:[#allocation2] sm:$0x1] %v12_v0 }
   0x3   :  { %14 = vsyncpa [#allocation4], 0 }
   0x4   :  { %16 = vsyncpa [#allocation4 + $0x1], 0  ;;  %s1241_s26 = smov 0   ;;  %s1243_s27 = smov 0  }
   0x5   :  { %s1245_s28 = smov 0   ;;  %s1247_s29 = smov 0  }
   0x6 LB: > { %s916_s6 = sadd.s32 4294967295, %s1192_s29   ;;  %s917_s30 = sadd.s32 4294967294, %s1192_s29   ;;  %s1192_s29 = sphi %s1247_s29, %s1535_s29   ;;  %s1188_s28 = sphi %s1245_s28, %s1534_s28   ;;  %s1184_s27 = sphi %s1243_s27, %s1533_s27   ;;  %s1180_s26 = sphi %s1241_s26, %s1532_s26  }
   0x7   : > { %s1264_s8 = sadd.s32 1, %s1192_s29   ;;  %s181_s9 = sadd.s32 1, %s1188_s28 }
   0x8   : > { %s178_s10 = ssub.s32 %s1192_s29, %s1264_s8  ;;  %p191_p0 = scmp.ne.s32.totalorder %s1188_s28, %s1184_s27 }
   0x9   : > { %p179_p1 = scmp.eq.s32.totalorder %s178_s10, 0  ;;  %p192_p2 = scmp.eq.s32.totalorder %s916_s6, 1 }
   0xa   : > { %p197_p3 = scmp.ne.s32.totalorder %s1184_s27, %s1180_s26  ;;  %p198_p4 = scmp.eq.s32.totalorder %s917_s30, 1 }
   0xb   : > { %s1274_s11 = scalar_select %p179_p1, %s1188_s28, %s181_s9  }
   0xc   : > { %p1276_p5 = por %p192_p2, %p191_p0  ;;  %p1280_p6 = por %p198_p4, %p197_p3 }
   0xd   : > { %p920_p7 = scmp.ge.s32.totalorder %s1192_s29, 1  ;;  %p243_p8 = scmp.lt.s32.totalorder %s1192_s29, 3 }
   0xf   : > { %p244_p9 = pnand %p920_p7, %p243_p8 }
  0x10   : > { %s1286_s14 = sshll.u32 (!%p244_p9), %s916_s6, 5  ;;  %vm370_vm0 = vcmask (!%p244_p9), 130048   ;;  %v1291_v1 = vld [vmem:[%s1521_s1] sm:$0xff] (!%p244_p9)  ;;  %v1194_v2 = vmov (!%p244_p9), 0   ;;  %v324_v4 = vld [vmem:[%s1522_s2 + $0x10] sm:$0xff] (!%p244_p9)  ;;  %v323_v5 = vld [vmem:[%s1522_s2 + $0x8] sm:$0xff] (!%p244_p9) }
  0x11   : > { %247 = sbr.rel (%p244_p9) target bundleno = 613 (0x265), region = 48  ;;  %p276_p10 = scmp.lt.s32.totalorder (!%p244_p9), %s1286_s14, 63  ;;  %1006 = vmatprep.mubr.msk.f32.mxu0 (!%p244_p9), %vm370_vm0, %v1291_v1  ;;  %1128 = vset.pattern.permute.xlu0 (!%p244_p9), %v1194_v2  ;;  %v322_v3 = vld [vmem:[%s1522_s2] sm:$0xff] (!%p244_p9)  ;;  %v325_v6 = vld [vmem:[%s1522_s2 + $0x18] sm:$0xff] (!%p244_p9)  ;;  %vm1316_vm1 = vmpackc.low (!%p244_p9), %vm370_vm0, %vm370_vm0  ;;  %vm648_vm2 = vcmask (!%p244_p9), 523264  }
  0x12   : > { %1129 = vset.pattern.permute.xlu1 (!%p244_p9), %v1194_v2  ;;  %332 = vperm.xlu0 (!%p244_p9), %1128, %v322_v3   ;;  %v326_v17 = vld [vmem:[%s1522_s2 + $0x20] sm:$0xff] (!%p244_p9)  ;;  %v327_v18 = vld [vmem:[%s1522_s2 + $0x28] sm:$0xff] (!%p244_p9)  ;;  %v328_v23 = vld [vmem:[%s1522_s2 + $0x30] sm:$0xff] (!%p244_p9)  ;;  %s1478_s23 = scalar_lea.hbm (!%p244_p9), %s1527_s7, %s1286_s14  ;;  %s1197_s6 = smov (!%p244_p9), [#allocation3]  }
  0x13   : > { %342 = vperm.xlu1 (!%p244_p9), %1129, %v324_v4   ;;  %v329_v24 = vld [vmem:[%s1522_s2 + $0x38] sm:$0xff] (!%p244_p9)  ;;  %v624_v27 = vld [vmem:[%s1524_s4] sm:$0xff] (!%p244_p9)  ;;  %v625_v28 = vld [vmem:[%s1524_s4 + $0x8] sm:$0xff] (!%p244_p9)  ;;  %s1134_s30 = sshll.u32 (!%p244_p9), %s1197_s6, 4  ;;  %s1135_s30 = int_to_ptr.vmem [resolvable:$false] %s1134_s30 }
  0x14   : > { %v626_v33 = vld [vmem:[%s1524_s4 + $0x10] sm:$0xff] (!%p244_p9)  ;;  %v627_v34 = vld [vmem:[%s1524_s4 + $0x18] sm:$0xff] (!%p244_p9)  ;;  %v758_v37 = vld [vmem:[%s1525_s5] sm:$0xff] (!%p244_p9)  ;;  %s1136_s9 = scalar_lea.vmem (!%p244_p9), %s1135_s30, 64 }
  0x15   : > { %v759_v38 = vld [vmem:[%s1525_s5 + $0x8] sm:$0xff] (!%p244_p9)  ;;  %v760_v43 = vld [vmem:[%s1525_s5 + $0x10] sm:$0xff] (!%p244_p9)  ;;  %v761_v44 = vld [vmem:[%s1525_s5 + $0x18] sm:$0xff] (!%p244_p9) }
  0x16   : > { %337 = vperm.xlu0 (!%p244_p9), %1128, %v323_v5   ;;  %v808_v47 = vld [vmem:[#allocation2] sm:$0x1] (!%p244_p9)  ;;  %v317_v7 = vld [vmem:[%s1521_s1 + $0x18] sm:$0xff] (!%p244_p9) }
  0x17   : > { %347 = vperm.xlu1 (!%p244_p9), %1129, %v325_v6   ;;  %v315_v6 = vld [vmem:[%s1521_s1 + $0x8] sm:$0xff] (!%p244_p9) }
  0x18   : > { %s277_s17 = scalar_select %p276_p10, %s1286_s14, 63 }
  0x1a   : > { %s923_s22 = sshll.u32 %s277_s17, 3  ;;  %352 = vperm.xlu0 %1128, %v326_v17   ;;  %s272_s17 = sand.u32 1, %s1184_s27  }
  0x1b   : > { %s1312_s10 = scalar_lea.vmem %s1520_s0, %s923_s22  ;;  %357 = vperm.xlu1 %1129, %v327_v18   ;;  %s921_s18 = sshll.u32 %s272_s17, 1 }
  0x1c   : > { %v298_v8 = vld [vmem:[%s1312_s10 + $0x80] sm:$0xff]  ;;  %v299_v9 = vld [vmem:[%s1312_s10 + $0x88] sm:$0xff]  ;;  %v300_v13 = vld [vmem:[%s1312_s10 + $0x90] sm:$0xff]  ;;  %s274_s19 = scalar_lea.vmem [#allocation3], %s921_s18  ;;  %s844_s24 = scalar_lea.sflag [#allocation4], %s272_s17 }
  0x1d   : > { %v282_v10 = vld [vmem:[%s1312_s10] sm:$0xff]  ;;  %v1022_v11 = vpack.c.bf16 %v299_v9, %v298_v8  ;;  %v283_v12 = vld [vmem:[%s1312_s10 + $0x8] sm:$0xff]  ;;  %v301_v14 = vld [vmem:[%s1312_s10 + $0x98] sm:$0xff]  ;;  %s858_s20 = sshll.u32 %s274_s19, 4  ;;  %s1480_s20 = int_to_ptr.vmem [resolvable:$true] %s858_s20 }
  0x1e   : > { %v1025_v15 = vpack.c.bf16 %v283_v12, %v282_v10  ;;  %v1028_v16 = vpack.c.bf16 %v301_v14, %v300_v13  ;;  %v284_v19 = vld [vmem:[%s1312_s10 + $0x10] sm:$0xff]  ;;  %v285_v20 = vld [vmem:[%s1312_s10 + $0x18] sm:$0xff]  ;;  %v302_v21 = vld [vmem:[%s1312_s10 + $0xa0] sm:$0xff]  ;;  %362 = vperm.xlu0 %1128, %v328_v23   ;;  %v1195_v12 = vmov 0.0   ;;  %s1130_s25 = scalar_lea.vmem %s1480_s20, 32  ;;  %p1137_p0 = scmp.lt.s32.totalorder %s1480_s20, %s1135_s30 }
  0x1f   : > { %1024 = vmatprep.subr.msk.bf16.mxu0 %vm1316_vm1, %v1022_v11  ;;  %v303_v22 = vld [vmem:[%s1312_s10 + $0xa8] sm:$0xff]  ;;  %v1031_v25 = vpack.c.bf16 %v285_v20, %v284_v19  ;;  %367 = vperm.xlu1 %1129, %v329_v24   ;;  %v286_v29 = vld [vmem:[%s1312_s10 + $0x20] sm:$0xff]  ;;  %v304_v31 = vld [vmem:[%s1312_s10 + $0xb0] sm:$0xff]  ;;  %p1131_p11 = scmp.ne.s32.totalorder %s1480_s20, %s1130_s25  ;;  %p1138_p1 = scmp.lt.s32.totalorder %s1136_s9, %s1130_s25 }
  0x20   : > { %1027 = vmatpush3.bf16.xpose.msk.msra.mxu0 %vm1316_vm1, %v1025_v15  ;;  %v1034_v26 = vpack.c.bf16 %v303_v22, %v302_v21  ;;  %v287_v30 = vld [vmem:[%s1312_s10 + $0x28] sm:$0xff]  ;;  %v305_v32 = vld [vmem:[%s1312_s10 + $0xb8] sm:$0xff]  ;;  %v288_v39 = vld [vmem:[%s1312_s10 + $0x30] sm:$0xff]  ;;  %725 = vmatprep.mubr.f32.mxu1 %v1195_v12 }
  0x21   : > { %1030 = vmatprep.subr.msk.bf16.mxu0 %vm1316_vm1, %v1028_v16  ;;  %v1037_v35 = vpack.c.bf16 %v287_v30, %v286_v29  ;;  %v1040_v36 = vpack.c.bf16 %v305_v32, %v304_v31  ;;  %v289_v40 = vld [vmem:[%s1312_s10 + $0x38] sm:$0xff]  ;;  %v306_v41 = vld [vmem:[%s1312_s10 + $0xc0] sm:$0xff]  ;;  %v307_v42 = vld [vmem:[%s1312_s10 + $0xc8] sm:$0xff]  ;;  %p1132_p12 = pnand %p1131_p11, %p1276_p5  ;;  %p1139_p2 = por %p1138_p1, %p1137_p0 }
  0x22   : > { %630 = vperm.xlu0 %1128, %v624_v27   ;;  %v1043_v45 = vpack.c.bf16 %v289_v40, %v288_v39  ;;  %v1046_v46 = vpack.c.bf16 %v307_v42, %v306_v41  ;;  %v290_v48 = vld [vmem:[%s1312_s10 + $0x40] sm:$0xff]  ;;  %v291_v49 = vld [vmem:[%s1312_s10 + $0x48] sm:$0xff]  ;;  %v308_v50 = vld [vmem:[%s1312_s10 + $0xd0] sm:$0xff] }
  0x23   : > { %635 = vperm.xlu1 %1129, %v625_v28   ;;  %v309_v51 = vld [vmem:[%s1312_s10 + $0xd8] sm:$0xff]  ;;  %v1049_v52 = vpack.c.bf16 %v291_v49, %v290_v48  ;;  %v292_v54 = vld [vmem:[%s1312_s10 + $0x50] sm:$0xff]  ;;  %v310_v56 = vld [vmem:[%s1312_s10 + $0xe0] sm:$0xff]  ;;  %p1133_p13 = pneg %p1132_p12 }
  0x24   : > { %v1052_v53 = vpack.c.bf16 %v309_v51, %v308_v50  ;;  %v293_v55 = vld [vmem:[%s1312_s10 + $0x58] sm:$0xff]  ;;  %v311_v57 = vld [vmem:[%s1312_s10 + $0xe8] sm:$0xff]  ;;  %v294_v60 = vld [vmem:[%s1312_s10 + $0x60] sm:$0xff] }
  0x25   : > { %v1055_v58 = vpack.c.bf16 %v293_v55, %v292_v54  ;;  %v1058_v59 = vpack.c.bf16 %v311_v57, %v310_v56  ;;  %v295_v61 = vld [vmem:[%s1312_s10 + $0x68] sm:$0xff]  ;;  %v312_v62 = vld [vmem:[%s1312_s10 + $0xf0] sm:$0xff]  ;;  %v313_v63 = vld [vmem:[%s1312_s10 + $0xf8] sm:$0xff]  ;;  %p1140_p3 = pnand %p1139_p2, %p1133_p13 }
  0x26   : > { %640 = vperm.xlu0 %1128, %v626_v33   ;;  %v1061_v0 = vpack.c.bf16 %v295_v61, %v294_v60  ;;  %v1064_v2 = vpack.c.bf16 %v313_v63, %v312_v62  ;;  %v296_v3 = vld [vmem:[%s1312_s10 + $0x70] sm:$0xff]  ;;  %v297_v4 = vld [vmem:[%s1312_s10 + $0x78] sm:$0xff]  ;;  %v319_v9 = vld [vmem:[%s1521_s1 + $0x28] sm:$0xff] }
  0x27   : > { %645 = vperm.xlu1 %1129, %v627_v34   ;;  %v1067_v5 = vpack.c.bf16 %v297_v4, %v296_v3  ;;  %v316_v8 = vld [vmem:[%s1521_s1 + $0x10] sm:$0xff]  ;;  %v321_v11 = vld [vmem:[%s1521_s1 + $0x38] sm:$0xff] }
  0x28   : > { %1033 = vmatpush3.bf16.xpose.msk.msra.mxu0 %vm1316_vm1, %v1031_v25  ;;  %v320_v10 = vld [vmem:[%s1521_s1 + $0x30] sm:$0xff] }
  0x29   : > { %1036 = vmatprep.subr.msk.bf16.mxu0 %vm1316_vm1, %v1034_v26 }
  0x2a   : > { %764 = vperm.xlu0 %1128, %v758_v37  }
  0x2b   : > { %769 = vperm.xlu1 %1129, %v759_v38  }
  0x2e   : > { %774 = vperm.xlu0 %1128, %v760_v43  }
  0x2f   : > { %779 = vperm.xlu1 %1129, %v761_v44  }
  0x30   : > { %1039 = vmatpush3.bf16.xpose.msk.msra.mxu0 %vm1316_vm1, %v1037_v35 }
  0x31   : > { %1042 = vmatprep.subr.msk.bf16.mxu0 %vm1316_vm1, %v1040_v36 }
  0x32   : > { %811 = vperm.xlu0 %1128, %v808_v47  }
  0x38   : > { %1045 = vmatpush3.bf16.xpose.msk.msra.mxu0 %vm1316_vm1, %v1043_v45 }
  0x39   : > { %1048 = vmatprep.subr.msk.bf16.mxu0 %vm1316_vm1, %v1046_v46 }
  0x40   : > { %1051 = vmatpush3.bf16.xpose.msk.msra.mxu0 %vm1316_vm1, %v1049_v52 }
  0x41   : > { %1054 = vmatprep.subr.msk.bf16.mxu0 %vm1316_vm1, %v1052_v53 }
  0x48   : > { %1057 = vmatpush3.bf16.xpose.msk.msra.mxu0 %vm1316_vm1, %v1055_v58 }
  0x49   : > { %1060 = vmatprep.subr.msk.bf16.mxu0 %vm1316_vm1, %v1058_v59 }
  0x50   : > { %1063 = vmatpush3.bf16.xpose.msk.msra.mxu0 %vm1316_vm1, %v1061_v0 }
  0x51   : > { %1066 = vmatprep.subr.msk.bf16.mxu0 %vm1316_vm1, %v1064_v2 }
  0x58   : > { %1069 = vmatpush3.bf16.xpose.msk.msra.mxu0 %vm1316_vm1, %v1067_v5 }
  0x5f   : > { %1007 = vmatmul.mubr.msk.f32.vlgmr.msra.gmra.mrb[0].mxu0 %vm370_vm0, %v1291_v1  ;;  %v318_v1 = vld [vmem:[%s1521_s1 + $0x20] sm:$0xff] }
  0x60   : > { %1008 = vmatprep.mubr.msk.f32.mxu0 %vm370_vm0, %v315_v6 }
  0x63   : > { %1009 = vmatmul.mubr.msk.f32.gmra.mrb[2].mxu0 %vm370_vm0, %v315_v6 }
  0x64   : > { %1010 = vmatprep.mubr.msk.f32.mxu0 %vm370_vm0, %v316_v8 }
  0x67   : > { %1011 = vmatmul.mubr.msk.f32.gmra.mrb[4].mxu0 %vm370_vm0, %v316_v8 }
  0x68   : > { %1012 = vmatprep.mubr.msk.f32.mxu0 %vm370_vm0, %v317_v7 }
  0x6b   : > { %1013 = vmatmul.mubr.msk.f32.gmra.mrb[6].mxu0 %vm370_vm0, %v317_v7 }
  0x6c   : > { %1014 = vmatprep.mubr.msk.f32.mxu0 %vm370_vm0, %v318_v1 }
  0x6f   : > { %1015 = vmatmul.mubr.msk.f32.gmra.mrb[8].mxu0 %vm370_vm0, %v318_v1 }
  0x70   : > { %1016 = vmatprep.mubr.msk.f32.mxu0 %vm370_vm0, %v319_v9 }
  0x73   : > { %1017 = vmatmul.mubr.msk.f32.gmra.mrb[10].mxu0 %vm370_vm0, %v319_v9 }
  0x74   : > { %1018 = vmatprep.mubr.msk.f32.mxu0 %vm370_vm0, %v320_v10 }
  0x77   : > { %1019 = vmatmul.mubr.msk.f32.gmra.mrb[12].mxu0 %vm370_vm0, %v320_v10 }
  0x78   : > { %1020 = vmatprep.mubr.msk.f32.mxu0 %vm370_vm0, %v321_v11 }
  0x7b   : > { %1021 = vmatmul.mubr.msk.f32.gmra.mrb[14].mxu0 %vm370_vm0, %v321_v11 }
  0x91   : > { %v333_v13 = vpop.permute.xlu0 %332 }
  0x92   : > { %v343_v22 = vpop.permute.xlu1 %342 }
  0x95   : > { %v338_v17 = vpop.permute.xlu0 %337 }
  0x96   : > { %v348_v33 = vpop.permute.xlu1 %347 }
  0x99   : > { %v353_v46 = vpop.permute.xlu0 %352 }
  0x9a   : > { %v358_v49 = vpop.permute.xlu1 %357 }
  0x9d   : > { %v363_v62 = vpop.permute.xlu0 %362 }
  0x9e   : > { %v368_v2 = vpop.permute.xlu1 %367 }
 0x132   : > { %v557_v14 = vpop.f32.mrb[0].mxu0 }
 0x133   : > { %v559_v15 = vpop.f32.mrb[1].mxu0  ;;  %v558_v16 = vadd.f32 %v557_v14, %v333_v13  ;;  %v620_v14 = vld [vmem:[%s1523_s3] sm:$0xff] }
 0x134   : > { %v560_v18 = vadd.f32 %v559_v15, %v333_v13  ;;  %v621_v15 = vld [vmem:[%s1523_s3 + $0x8] sm:$0xff] }
 0x135   : > { %v604_v24 = vmax.f32 %v558_v16, 0.0  ;;  %v622_v16 = vld [vmem:[%s1523_s3 + $0x10] sm:$0xff] }
 0x136   : > { %v563_v19 = vpop.f32.mrb[2].mxu0  ;;  %v605_v26 = vmax.f32 %v560_v18, 0.0  ;;  %v631_v18 = vpop.permute.xlu0 %630 }
 0x137   : > { %v564_v20 = vadd.f32 %v563_v19, %v338_v17  ;;  %v565_v21 = vpop.f32.mrb[3].mxu0  ;;  %v636_v19 = vpop.permute.xlu1 %635 }
 0x138   : > { %v566_v23 = vadd.f32 %v565_v21, %v338_v17  ;;  %v623_v17 = vld [vmem:[%s1523_s3 + $0x18] sm:$0xff] }
 0x139   : > { %v606_v25 = vmax.f32 %v564_v20, 0.0 }
 0x13a   : > { %v607_v27 = vmax.f32 %v566_v23, 0.0  ;;  %v569_v28 = vpop.f32.mrb[4].mxu0  ;;  %v641_v20 = vpop.permute.xlu0 %640 }
 0x13b   : > { %v571_v29 = vpop.f32.mrb[5].mxu0  ;;  %v1072_v30 = vpack.c.bf16 %v606_v25, %v604_v24  ;;  %v570_v32 = vadd.f32 %v569_v28, %v343_v22  ;;  %v646_v24 = vpop.permute.xlu1 %645 }
 0x13c   : > { %v1070_v31 = vpack.c.bf16 %v607_v27, %v605_v26  ;;  %v572_v34 = vadd.f32 %v571_v29, %v343_v22 }
 0x13d   : > { %v608_v39 = vmax.f32 %v570_v32, 0.0 }
 0x13e   : > { %v575_v35 = vpop.f32.mrb[6].mxu0  ;;  %1071 = vmatprep.subr.bf16.mxu1 %v1070_v31  ;;  %v609_v41 = vmax.f32 %v572_v34, 0.0 }
 0x13f   : > { %v576_v36 = vadd.f32 %v575_v35, %v348_v33  ;;  %v577_v37 = vpop.f32.mrb[7].mxu0  ;;  %1073 = vmatpush1.bf16.msra.mxu1 %v1072_v30  ;;  %v765_v30 = vpop.permute.xlu0 %764 }
 0x140   : > { %v578_v38 = vadd.f32 %v577_v37, %v348_v33  ;;  %v770_v33 = vpop.permute.xlu1 %769 }
 0x141   : > { %v610_v40 = vmax.f32 %v576_v36, 0.0 }
 0x142   : > { %v611_v42 = vmax.f32 %v578_v38, 0.0  ;;  %v581_v43 = vpop.f32.mrb[8].mxu0 }
 0x143   : > { %v1076_v44 = vpack.c.bf16 %v610_v40, %v608_v39  ;;  %v583_v45 = vpop.f32.mrb[9].mxu0  ;;  %v582_v48 = vadd.f32 %v581_v43, %v353_v46 }
 0x144   : > { %v1074_v47 = vpack.c.bf16 %v611_v42, %v609_v41  ;;  %v584_v50 = vadd.f32 %v583_v45, %v353_v46  ;;  %v775_v45 = vpop.permute.xlu0 %774 }
 0x145   : > { %v612_v55 = vmax.f32 %v582_v48, 0.0 }
 0x146   : > { %v587_v51 = vpop.f32.mrb[10].mxu0  ;;  %1075 = vmatprep.subr.bf16.mxu1 %v1074_v47  ;;  %v613_v57 = vmax.f32 %v584_v50, 0.0 }
 0x147   : > { %v588_v52 = vadd.f32 %v587_v51, %v358_v49  ;;  %v589_v53 = vpop.f32.mrb[11].mxu0  ;;  %1077 = vmatpush1.bf16.msra.mxu1 %v1076_v44 }
 0x148   : > { %v590_v54 = vadd.f32 %v589_v53, %v358_v49 }
 0x149   : > { %v614_v56 = vmax.f32 %v588_v52, 0.0 }
 0x14a   : > { %v615_v58 = vmax.f32 %v590_v54, 0.0  ;;  %v593_v59 = vpop.f32.mrb[12].mxu0 }
 0x14b   : > { %v1080_v60 = vpack.c.bf16 %v614_v56, %v612_v55  ;;  %v595_v61 = vpop.f32.mrb[13].mxu0  ;;  %v594_v0 = vadd.f32 %v593_v59, %v363_v62  ;;  %v780_v56 = vpop.permute.xlu1 %779 }
 0x14c   : > { %v1078_v63 = vpack.c.bf16 %v615_v58, %v613_v57  ;;  %v596_v3 = vadd.f32 %v595_v61, %v363_v62  ;;  %v814_v61 = vlaneseq }
 0x14d   : > { %v616_v7 = vmax.f32 %v594_v0, 0.0 }
 0x14e   : > { %v599_v4 = vpop.f32.mrb[14].mxu0  ;;  %1079 = vmatprep.subr.bf16.mxu1 %v1078_v63  ;;  %v617_v9 = vmax.f32 %v596_v3, 0.0  ;;  %v815_v3 = vshrl.u32 %v814_v61, 7  ;;  %vm840_vm3 = vcmp.lt.s32.totalorder %v814_v61, 256 }
 0x14f   : > { %v600_v5 = vadd.f32 %v599_v4, %v368_v2  ;;  %v601_v6 = vpop.f32.mrb[15].mxu0  ;;  %1081 = vmatpush1.bf16.msra.mxu1 %v1080_v60 }
 0x150   : > { %v602_v8 = vadd.f32 %v601_v6, %v368_v2 }
 0x151   : > { %v618_v1 = vmax.f32 %v600_v5, 0.0 }
 0x152   : > { %v619_v10 = vmax.f32 %v602_v8, 0.0  ;;  %v1196_v8 = vmov 1966171168  }
 0x153   : > { %v1084_v11 = vpack.c.bf16 %v618_v1, %v616_v7  ;;  %v824_v7 = vunpack.c.l.s4 %v1196_v8 }
 0x154   : > { %v1082_v13 = vpack.c.bf16 %v619_v10, %v617_v9  ;;  %v816_v9 = vsub.s32 0, %v815_v3 }
 0x156   : > { %1083 = vmatprep.subr.bf16.mxu1 %v1082_v13 }
 0x157   : > { %1085 = vmatpush1.bf16.msra.mxu1 %v1084_v11  ;;  %v812_v11 = vpop.permute.xlu0 %811 }
 0x15a   : > { %964 = vmatmul.mubr.msk.f32.vlgmr.msra.gmra.mrb[0].mxu1 %vm648_vm2, %v620_v14 }
 0x15b   : > { %731 = vmatprep.mubr.f32.mxu1 %v1195_v12 }
 0x15e   : > { %965 = vmatmul.mubr.msk.f32.gmra.mrb[2].mxu1 %vm648_vm2, %v621_v15  ;;  %v825_v15 = vunpack.c.0.s8 %v824_v7 }
 0x15f   : > { %737 = vmatprep.mubr.f32.mxu1 %v1195_v12 }
 0x162   : > { %966 = vmatmul.mubr.msk.f32.gmra.mrb[4].mxu1 %vm648_vm2, %v622_v16 }
 0x163   : > { %743 = vmatprep.mubr.f32.mxu1 %v1195_v12 }
 0x166   : > { %967 = vmatmul.mubr.msk.f32.gmra.mrb[6].mxu1 %vm648_vm2, %v623_v17  ;;  %v817_v17 = vrot.slane %v812_v11, %v816_v9 }
 0x22d   : > { %v727_v21 = vpop.f32.mrb[0].mxu1 }
 0x22e   : > { %v728_v22 = vadd.f32 %v727_v21, %v631_v18  ;;  %v729_v23 = vpop.f32.mrb[1].mxu1  ;;  %v828_v21 = vsub.s32 %v825_v15, %v815_v3 }
 0x22f   : > { %v730_v25 = vadd.f32 %v729_v23, %v631_v18 }
 0x230   : > { %v750_v27 = vmax.f32 %v728_v22, 0.0 }
 0x231   : > { %v733_v26 = vpop.f32.mrb[2].mxu1  ;;  %v751_v31 = vmax.f32 %v730_v25, 0.0 }
 0x232   : > { %v734_v28 = vadd.f32 %v733_v26, %v636_v19  ;;  %v735_v29 = vpop.f32.mrb[3].mxu1  ;;  %v782_v36 = vmul.f32 %v765_v30, %v750_v27 }
 0x233   : > { %v736_v12 = vadd.f32 %v735_v29, %v636_v19  ;;  %v783_v40 = vmul.f32 %v765_v30, %v751_v31 }
 0x234   : > { %v752_v32 = vmax.f32 %v734_v28, 0.0 }
 0x235   : > { %v753_v34 = vmax.f32 %v736_v12, 0.0  ;;  %v739_v35 = vpop.f32.mrb[4].mxu1 }
 0x236   : > { %v784_v37 = vmul.f32 %v770_v33, %v752_v32  ;;  %v740_v38 = vadd.f32 %v739_v35, %v641_v20  ;;  %v741_v39 = vpop.f32.mrb[5].mxu1 }
 0x237   : > { %v785_v41 = vmul.f32 %v770_v33, %v753_v34  ;;  %v742_v42 = vadd.f32 %v741_v39, %v641_v20 }
 0x238   : > { %v790_v43 = vadd.f32 %v784_v37, %v782_v36  ;;  %v754_v44 = vmax.f32 %v740_v38, 0.0 }
 0x239   : > { %v799_v46 = vadd.f32 %v785_v41, %v783_v40  ;;  %v755_v47 = vmax.f32 %v742_v42, 0.0  ;;  %v745_v48 = vpop.f32.mrb[6].mxu1 }
 0x23a   : > { %v786_v49 = vmul.f32 %v775_v45, %v754_v44  ;;  %v746_v50 = vadd.f32 %v745_v48, %v646_v24  ;;  %v747_v51 = vpop.f32.mrb[7].mxu1 }
 0x23b   : > { %v787_v52 = vmul.f32 %v775_v45, %v755_v47  ;;  %v748_v53 = vadd.f32 %v747_v51, %v646_v24 }
 0x23c   : > { %v791_v54 = vadd.f32 %v790_v43, %v786_v49  ;;  %v756_v55 = vmax.f32 %v746_v50, 0.0 }
 0x23d   : > { %v800_v57 = vadd.f32 %v799_v46, %v787_v52  ;;  %v757_v58 = vmax.f32 %v748_v53, 0.0 }
 0x23e   : > { %v788_v59 = vmul.f32 %v780_v56, %v756_v55 }
 0x23f   : > { %v789_v60 = vmul.f32 %v780_v56, %v757_v58 }
 0x240   : > { %v792_v62 = vadd.f32 %v791_v54, %v788_v59 }
 0x241   : > { %v801_v63 = vadd.f32 %v800_v57, %v789_v60 }
 0x242   : > { %v793_v0 = vrot.slane %v792_v62, 4 }
 0x243   : > { %v802_v2 = vrot.slane %v801_v63, 4 }
 0x244   : > { %v794_v4 = vadd.f32 %v793_v0, %v792_v62 }
 0x245   : > { %v803_v5 = vadd.f32 %v802_v2, %v801_v63 }
 0x246   : > { %v795_v6 = vrot.slane %v794_v4, 2 }
 0x247   : > { %v804_v1 = vrot.slane %v803_v5, 2 }
 0x248   : > { %v796_v10 = vadd.f32 %v795_v6, %v794_v4 }
 0x249   : > { %v805_v13 = vadd.f32 %v804_v1, %v803_v5 }
 0x24a   : > { %v797_v14 = vrot.slane %v796_v10, 1 }
 0x24b   : > { %v806_v16 = vrot.slane %v805_v13, 1 }
 0x24c   : > { %v798_v18 = vadd.f32 %v797_v14, %v796_v10 }
 0x24d   : > { %v807_v19 = vadd.f32 %v806_v16, %v805_v13 }
 0x24e   : > { %v818_v20 = vadd.f32 %v817_v17, %v798_v18 }
 0x24f   : > { %v819_v22 = vadd.f32 %v817_v17, %v807_v19 }
 0x251   : > { %v822_v23 = vcombine.low %v818_v20, %v819_v22 }
 0x253   : > { %v829_v24 = vrot.slane %v822_v23, %v828_v21 }
 0x255   : > { %v836_v25 = vrot.slane %v829_v24, %v828_v21 }
 0x257   : > { %842 = vst.msk [vmem:[%s274_s19] sm:$0x3] %vm840_vm3, %v836_v25 }
 0x258   : > { %1143 = shalt.err (!%p1140_p3)
}
 0x259   : > { %s1144_s14 = scalar_lea.hbm %s1478_s23, 32  ;;  %s1148_s16 = scalar_lea.hbm %s1527_s7, 64 }
 0x25a   : > { %p1145_p4 = scmp.ne.s32.totalorder %s1478_s23, %s1144_s14  ;;  %p1149_p9 = scmp.lt.u32.totalorder %s1478_s23, %s1527_s7 }
 0x25b   : > { %p1150_p10 = scmp.lt.u32.totalorder %s1148_s16, %s1144_s14  ;;  %p1152_p12 = scmp.lt.u32.totalorder %s1144_s14, %s1478_s23 }
 0x25c   : > { %p1146_p7 = pnand %p1145_p4, %p1276_p5 }
 0x25d   : > { %p1151_p11 = por %p1150_p10, %p1149_p9 }
 0x25e   : > { %p1147_p8 = pneg %p1146_p7 }
 0x25f   : > { %p1153_p13 = por %p1152_p12, %p1151_p11 }
 0x261   : > { %p1154_p0 = pnand %p1153_p13, %p1147_p8 }
 0x263   : > { %1157 = shalt.err (!%p1154_p0)
}
 0x264   : > { %1086 = dma.vmem_to_hbm [thread:$0]  (%p1276_p5), %s1480_s20, 32, %s1478_s23, %s844_s24  }
 0x265 PF: > { %p1092_p1 = scmp.ge.s32.totalorder %s1192_s29, 2  ;;  %s870_s19 = sand.u32 1, %s1180_s26  }
 0x266   : > { %s871_s21 = scalar_lea.sflag [#allocation4], %s870_s19 }
 0x267   : > { %p1089_p2 = pnand %p1092_p1, %p1280_p6 }
 0x269   : > { %1175 = dma.done.wait (!%p1089_p2), %s871_s21, 32  }
 0x26a   : > { %1177 = vsyncadd (!%p1089_p2), %s871_s21, 4294967264  ;;  %p19_p3 = scmp.ge.s32.totalorder %s1264_s8, 4   ;;  %s1532_s26 = smov %s1184_s27 }
 0x26b   : > { %s1533_s27 = smov %s1188_s28  ;;  %s1534_s28 = smov %s1274_s11 }
 0x26c   : > { %s1535_s29 = smov %s1264_s8  ;;  %21 = sbr.rel (!%p19_p3) target bundleno = 6 (0x6), region = 83 }
 0x273   :  { %876 = vsyncpa [#allocation4], 1 }
 0x274   :  { %878 = vsyncpa [#allocation4 + $0x1], 1 }

</bundles_post_ra>
